<compile_context>
chip_gen: v6e
topology: v6e:2x2x1
jax: 0.10.0
libtpu: 0.0.40
codegen_flags: <defaults>
</compile_context>

<pallas_src>
import functools

import jax
import jax.numpy as jnp
from jax.experimental import pallas as pl
from jax.experimental.pallas import tpu as pltpu


def _round_up(x, m):
    return ((x + m - 1) // m) * m


def fcbody_kernel(x_ref, w1_ref, b1_ref, w2_ref, b2_ref, o_ref):
    """Fused 2-layer MLP: relu(relu(x @ W1 + b1) @ W2 + b2).

    x / W1 / W2 are bf16 (MXU-native); both matmuls accumulate in f32 and the
    bias-add + ReLU run on the f32 accumulator (correct on v5e, which has no
    bf16 VPU path).
    """
    x = x_ref[...]                                                     # (TB, Kp) bf16
    h = jnp.dot(x, w1_ref[...], preferred_element_type=jnp.float32)   # (TB, H1) f32, MXU
    h = jnp.maximum(h + b1_ref[...], 0.0)                             # bias + ReLU, f32 VPU
    y = jnp.dot(h.astype(jnp.bfloat16), w2_ref[...],
                preferred_element_type=jnp.float32)                   # (TB, H2) f32, MXU
    o_ref[...] = jnp.maximum(y + b2_ref[...], 0.0)


@functools.partial(jax.jit, static_argnames=("tb",))
def fcbody_forward(x, w1, b1, w2, b2, *, tb=256):
    """FCBody forward. x: (B, d_in) f32; w: (in, out) f32; b: (1, out) f32."""
    B, d_in = x.shape
    h1 = w1.shape[1]
    h2 = w2.shape[1]

    # Pad contraction dim to a multiple of 128 (lane-aligned, full MXU K pass).
    k_pad = _round_up(max(d_in, 128), 128)
    # bf16 activations/weights; biases stay f32 for the accumulator-side add.
    x_b = jnp.pad(x.astype(jnp.bfloat16), ((0, 0), (0, k_pad - d_in)))
    w1_b = jnp.pad(w1.astype(jnp.bfloat16), ((0, k_pad - d_in), (0, 0)))
    w2_b = w2.astype(jnp.bfloat16)
    b1_f = b1.astype(jnp.float32).reshape(1, h1)
    b2_f = b2.astype(jnp.float32).reshape(1, h2)

    if B <= tb:
        # Single block: no grid -> no pipeline prologue/epilogue, weights loaded once.
        b_pad = _round_up(max(B, 8), 8)
        x_b = jnp.pad(x_b, ((0, b_pad - B), (0, 0)))
        out = pl.pallas_call(
            fcbody_kernel,
            out_shape=jax.ShapeDtypeStruct((b_pad, h2), jnp.float32),
            in_specs=[pl.BlockSpec(memory_space=pltpu.MemorySpace.VMEM)] * 5,
            out_specs=pl.BlockSpec(memory_space=pltpu.MemorySpace.VMEM),
        )(x_b, w1_b, b1_f, w2_b, b2_f)
        return out[:B]

    # Batch-tiled path: x/out tiled over the batch, weights/biases VMEM-resident
    # (block index constant across grid), batch axis parallel for v7x megacore.
    b_pad = _round_up(B, tb)
    x_b = jnp.pad(x_b, ((0, b_pad - B), (0, 0)))
    num_tiles = b_pad // tb
    out = pl.pallas_call(
        fcbody_kernel,
        out_shape=jax.ShapeDtypeStruct((b_pad, h2), jnp.float32),
        grid=(num_tiles,),
        in_specs=[
            pl.BlockSpec((tb, k_pad), lambda i: (i, 0)),
            pl.BlockSpec((k_pad, h1), lambda i: (0, 0)),
            pl.BlockSpec((1, h1), lambda i: (0, 0)),
            pl.BlockSpec((h1, h2), lambda i: (0, 0)),
            pl.BlockSpec((1, h2), lambda i: (0, 0)),
        ],
        out_specs=pl.BlockSpec((tb, h2), lambda i: (i, 0)),
        compiler_params=pltpu.CompilerParams(
            dimension_semantics=("parallel",),
        ),
    )(x_b, w1_b, b1_f, w2_b, b2_f)
    return out[:B]


def orthogonal_init(key, in_dim, out_dim, w_scale=1.0):
    """Deterministic analogue of nn.init.orthogonal_ (semi-orthogonal matrix)."""
    a = jax.random.normal(key, (max(in_dim, out_dim), min(in_dim, out_dim)),
                          dtype=jnp.float32)
    q, r = jnp.linalg.qr(a)
    q = q * jnp.sign(jnp.diagonal(r))[None, :]
    if in_dim >= out_dim:
        w = q[:in_dim, :out_dim]          # (in, out)
    else:
        w = q[:out_dim, :in_dim].T        # (in, out)
    return w * w_scale


def make_fcbody_params(key, state_dim, hidden_units=(256, 256)):
    dims = (state_dim,) + tuple(hidden_units)
    params = []
    for i, (d_in, d_out) in enumerate(zip(dims[:-1], dims[1:])):
        k = jax.random.fold_in(key, i)
        w = orthogonal_init(k, d_in, d_out, w_scale=1.0)     # (in, out)
        b = jnp.zeros((1, d_out), dtype=jnp.float32)          # bias init 0
        params.append((w, b))
    return params


def reference_forward(x, params):
    h = x
    for w, b in params:
        h = jnp.maximum(h @ w + b, 0.0)
    return h


if __name__ == "__main__":
    key = jax.random.PRNGKey(0)
    state_dim = 33
    hidden_units = (256, 256)

    pkey, xkey = jax.random.split(key)
    params = make_fcbody_params(pkey, state_dim, hidden_units)
    (w1, b1), (w2, b2) = params

    # Small batch -> grid-less single-block path.
    x_small = jax.random.normal(xkey, (8, state_dim), dtype=jnp.float32)
    out_small = jax.block_until_ready(fcbody_forward(x_small, w1, b1, w2, b2))
    ref_small = reference_forward(x_small, params)
    assert out_small.shape == (8, hidden_units[-1])
    assert jnp.allclose(out_small, ref_small, atol=5e-2, rtol=5e-2), \
        "mismatch vs reference (small batch)"

    # Larger batch -> batch-tiled path (resident weights, parallel batch axis).
    x_big = jax.random.normal(jax.random.fold_in(xkey, 1), (512, state_dim),
                              dtype=jnp.float32)
    out_big = jax.block_until_ready(fcbody_forward(x_big, w1, b1, w2, b2))
    ref_big = reference_forward(x_big, params)
    assert out_big.shape == (512, hidden_units[-1])
    assert jnp.allclose(out_big, ref_big, atol=5e-2, rtol=5e-2), \
        "mismatch vs reference (big batch)"

    print("KERNEL_OK")
</pallas_src>

<mosaic_0001>
module attributes {stable_mosaic.version = 11 : i64} {
  func.func @fcbody_kernel(%arg0: memref<8x128xbf16, #tpu.memory_space<vmem>>, %arg1: memref<128x256xbf16, #tpu.memory_space<vmem>>, %arg2: memref<1x256xf32, #tpu.memory_space<vmem>>, %arg3: memref<256x256xbf16, #tpu.memory_space<vmem>>, %arg4: memref<1x256xf32, #tpu.memory_space<vmem>>, %arg5: memref<8x256xf32, #tpu.memory_space<vmem>>) attributes {dimension_semantics = [], scalar_prefetch = 0 : i64, scratch_operands = 0 : i64, tpu.core_type = #tpu.core_type<tc>} {
    %c0 = arith.constant 0 : index
    %c0_0 = arith.constant 0 : index
    %0 = vector.load %arg0[%c0, %c0_0] : memref<8x128xbf16, #tpu.memory_space<vmem>>, vector<8x128xbf16>
    %c0_1 = arith.constant 0 : index
    %c0_2 = arith.constant 0 : index
    %1 = vector.load %arg1[%c0_1, %c0_2] : memref<128x256xbf16, #tpu.memory_space<vmem>>, vector<128x256xbf16>
    %cst = arith.constant dense<0.000000e+00> : vector<8x256xf32>
    %2 = tpu.matmul %0, %1, %cst {dimension_numbers = #tpu.dot_dimension_numbers<[1], [0], [0], [1], [0, 0, 1, 1], [], []>} : vector<8x128xbf16>, vector<128x256xbf16>, vector<8x256xf32> -> vector<8x256xf32>
    %c0_3 = arith.constant 0 : index
    %c0_4 = arith.constant 0 : index
    %3 = vector.load %arg2[%c0_3, %c0_4] : memref<1x256xf32, #tpu.memory_space<vmem>>, vector<1x256xf32>
    %4 = vector.broadcast %3 : vector<1x256xf32> to vector<8x256xf32>
    %5 = arith.addf %2, %4 : vector<8x256xf32>
    %cst_5 = arith.constant 0.000000e+00 : f32
    %6 = vector.broadcast %cst_5 : f32 to vector<8x256xf32>
    %7 = arith.maximumf %5, %6 : vector<8x256xf32>
    %8 = arith.truncf %7 : vector<8x256xf32> to vector<8x256xbf16>
    %c0_6 = arith.constant 0 : index
    %c0_7 = arith.constant 0 : index
    %9 = vector.load %arg3[%c0_6, %c0_7] : memref<256x256xbf16, #tpu.memory_space<vmem>>, vector<256x256xbf16>
    %cst_8 = arith.constant dense<0.000000e+00> : vector<8x256xf32>
    %10 = tpu.matmul %8, %9, %cst_8 {dimension_numbers = #tpu.dot_dimension_numbers<[1], [0], [0], [1], [0, 0, 1, 1], [], []>} : vector<8x256xbf16>, vector<256x256xbf16>, vector<8x256xf32> -> vector<8x256xf32>
    %c0_9 = arith.constant 0 : index
    %c0_10 = arith.constant 0 : index
    %11 = vector.load %arg4[%c0_9, %c0_10] : memref<1x256xf32, #tpu.memory_space<vmem>>, vector<1x256xf32>
    %12 = vector.broadcast %11 : vector<1x256xf32> to vector<8x256xf32>
    %13 = arith.addf %10, %12 : vector<8x256xf32>
    %cst_11 = arith.constant 0.000000e+00 : f32
    %14 = vector.broadcast %cst_11 : f32 to vector<8x256xf32>
    %15 = arith.maximumf %13, %14 : vector<8x256xf32>
    %c0_12 = arith.constant 0 : index
    %c0_13 = arith.constant 0 : index
    %16 = vector.load %arg5[%c0_12, %c0_13] : memref<8x256xf32, #tpu.memory_space<vmem>>, vector<8x256xf32>
    tpu.vector_store %arg5[%c0_12, %c0_13], %15 {strides = array<i32>} : memref<8x256xf32, #tpu.memory_space<vmem>>, vector<8x256xf32>,
    return
  }
}

</mosaic_0001>

<bundles_post_ra>
// kernel: fcbody_forward.1
= control target key start
LH: loop header
LB: loop body
LE: loop exit
PB: predicated region body
PF: predicated region fallthrough
CT: control target
= control target key end

     0   :  { %v583_v2 = vmov 0   ;;  %s771_s0 = inlined_call_operand.vmem [shape: bf16[8,128], index: 0, kind: input, shape index: {}]   ;;  %s772_s1 = inlined_call_operand.vmem [shape: bf16[128,256], index: 1, kind: input, shape index: {}]   ;;  %s773_s2 = inlined_call_operand.vmem [shape: f32[1,256], index: 2, kind: input, shape index: {}]   ;;  %s774_s3 = inlined_call_operand.vmem [shape: bf16[256,256], index: 3, kind: input, shape index: {}]   ;;  %s775_s4 = inlined_call_operand.vmem [shape: f32[1,256], index: 4, kind: input, shape index: {}]   ;;  %s776_s5 = inlined_call_operand.hbm [shape: f32[8,256], index: 5, kind: output, shape index: {}]  }
   0x1   :  { %v489_v0 = vld [vmem:[%s772_s1 + $0x74] ss:$8 sps:$4 sm:$0xff]   ;;  %v491_v1 = vld [vmem:[%s772_s1 + $0x70] ss:$8 sps:$4 sm:$0xff]   ;;  %163 = vmatprep.mubr.bf16.mxu0 %v583_v2  ;;  %v492_v3 = vld [vmem:[%s772_s1 + $0x64] ss:$8 sps:$4 sm:$0xff]  }
   0x2   :  { %131 = vmatprep.subr.bf16.mxu0 %v489_v0  ;;  %v494_v4 = vld [vmem:[%s772_s1 + $0x60] ss:$8 sps:$4 sm:$0xff]   ;;  %v495_v5 = vld [vmem:[%s772_s1 + $0x54] ss:$8 sps:$4 sm:$0xff]   ;;  %v497_v6 = vld [vmem:[%s772_s1 + $0x50] ss:$8 sps:$4 sm:$0xff]  }
   0x3   :  { %132 = vmatpush1.bf16.msra.mxu0 %v491_v1  ;;  %v498_v7 = vld [vmem:[%s772_s1 + $0x44] ss:$8 sps:$4 sm:$0xff]   ;;  %v500_v8 = vld [vmem:[%s772_s1 + $0x40] ss:$8 sps:$4 sm:$0xff]   ;;  %v501_v9 = vld [vmem:[%s772_s1 + $0x34] ss:$8 sps:$4 sm:$0xff]  }
   0x4   :  { %133 = vmatprep.subr.bf16.mxu0 %v492_v3  ;;  %v513_v10 = vld [vmem:[%s774_s3 + $0x74] ss:$8 sps:$4 sm:$0xff]   ;;  %v515_v11 = vld [vmem:[%s774_s3 + $0x70] ss:$8 sps:$4 sm:$0xff]   ;;  %v516_v12 = vld [vmem:[%s774_s3 + $0x64] ss:$8 sps:$4 sm:$0xff]  }
   0x5   :  { %380 = vmatprep.subr.bf16.mxu1 %v513_v10  ;;  %v503_v13 = vld [vmem:[%s772_s1 + $0x30] ss:$8 sps:$4 sm:$0xff]   ;;  %v518_v14 = vld [vmem:[%s774_s3 + $0x60] ss:$8 sps:$4 sm:$0xff]   ;;  %v519_v15 = vld [vmem:[%s774_s3 + $0x54] ss:$8 sps:$4 sm:$0xff]  }
   0x6   :  { %381 = vmatpush1.bf16.msra.mxu1 %v515_v11  ;;  %v504_v16 = vld [vmem:[%s772_s1 + $0x24] ss:$8 sps:$4 sm:$0xff]   ;;  %v506_v17 = vld [vmem:[%s772_s1 + $0x20] ss:$8 sps:$4 sm:$0xff]   ;;  %v521_v18 = vld [vmem:[%s774_s3 + $0x50] ss:$8 sps:$4 sm:$0xff]  }
   0x7   :  { %134 = vmatpush1.bf16.msra.mxu0 %v494_v4  ;;  %382 = vmatprep.subr.bf16.mxu1 %v516_v12  ;;  %v522_v19 = vld [vmem:[%s774_s3 + $0x44] ss:$8 sps:$4 sm:$0xff]   ;;  %v507_v20 = vld [vmem:[%s772_s1 + $0x14] ss:$8 sps:$4 sm:$0xff]   ;;  %v509_v21 = vld [vmem:[%s772_s1 + $0x10] ss:$8 sps:$4 sm:$0xff]  }
   0x8   :  { %135 = vmatprep.subr.bf16.mxu0 %v495_v5  ;;  %v524_v22 = vld [vmem:[%s774_s3 + $0x40] ss:$8 sps:$4 sm:$0xff]   ;;  %v525_v23 = vld [vmem:[%s774_s3 + $0x34] ss:$8 sps:$4 sm:$0xff]   ;;  %v510_v24 = vld [vmem:[%s772_s1 + $0x4] ss:$8 sps:$4 sm:$0xff]  }
   0x9   :  { %v512_v25 = vld [vmem:[%s772_s1] ss:$8 sps:$4 sm:$0xff]   ;;  %v527_v26 = vld [vmem:[%s774_s3 + $0x30] ss:$8 sps:$4 sm:$0xff]   ;;  %v528_v27 = vld [vmem:[%s774_s3 + $0x24] ss:$8 sps:$4 sm:$0xff]  }
   0xa   :  { %383 = vmatpush1.bf16.msra.mxu1 %v518_v14  ;;  %v22_v28 = vld [vmem:[%s771_s0] sm:$0xf]  ;;  %v531_v30 = vld [vmem:[%s774_s3 + $0x14] ss:$8 sps:$4 sm:$0xff]  }
   0xb   :  { %136 = vmatpush1.bf16.msra.mxu0 %v497_v6  ;;  %384 = vmatprep.subr.bf16.mxu1 %v519_v15  ;;  %v530_v29 = vld [vmem:[%s774_s3 + $0x20] ss:$8 sps:$4 sm:$0xff]  }
   0xc   :  { %137 = vmatprep.subr.bf16.mxu0 %v498_v7 }
   0xe   :  { %385 = vmatpush1.bf16.msra.mxu1 %v521_v18 }
   0xf   :  { %138 = vmatpush1.bf16.msra.mxu0 %v500_v8  ;;  %386 = vmatprep.subr.bf16.mxu1 %v522_v19 }
  0x10   :  { %139 = vmatprep.subr.bf16.mxu0 %v501_v9 }
  0x12   :  { %387 = vmatpush1.bf16.msra.mxu1 %v524_v22 }
  0x13   :  { %140 = vmatpush1.bf16.msra.mxu0 %v503_v13  ;;  %388 = vmatprep.subr.bf16.mxu1 %v525_v23 }
  0x14   :  { %141 = vmatprep.subr.bf16.mxu0 %v504_v16 }
  0x16   :  { %389 = vmatpush1.bf16.msra.mxu1 %v527_v26 }
  0x17   :  { %142 = vmatpush1.bf16.msra.mxu0 %v506_v17  ;;  %390 = vmatprep.subr.bf16.mxu1 %v528_v27 }
  0x18   :  { %143 = vmatprep.subr.bf16.mxu0 %v507_v20 }
  0x1b   :  { %144 = vmatpush1.bf16.msra.mxu0 %v509_v21 }
  0x1c   :  { %145 = vmatprep.subr.bf16.mxu0 %v510_v24 }
  0x1f   :  { %146 = vmatpush1.bf16.msra.mxu0 %v512_v25 }
  0x20   :  { %10 = vsyncpa [#allocation3], 0  ;;  %391 = vmatpush1.bf16.msra.mxu1 %v530_v29  ;;  %v533_v31 = vld [vmem:[%s774_s3 + $0x10] ss:$8 sps:$4 sm:$0xff]   ;;  %v534_v32 = vld [vmem:[%s774_s3 + $0x4] ss:$8 sps:$4 sm:$0xff]   ;;  %v41_v50 = vlaneseq }
  0x21   :  { %392 = vmatprep.subr.bf16.mxu1 %v531_v30  ;;  %v536_v33 = vld [vmem:[%s774_s3] ss:$8 sps:$4 sm:$0xff]   ;;  %v537_v34 = vld [vmem:[%s774_s3 + $0xf4] ss:$8 sps:$4 sm:$0xff]   ;;  %v539_v35 = vld [vmem:[%s774_s3 + $0xf0] ss:$8 sps:$4 sm:$0xff]  }
  0x22   :  { %164 = vmatmul.mubr.bf16.vlgmr.msra.gmra.mxu0 %v22_v28  ;;  %v540_v36 = vld [vmem:[%s774_s3 + $0xe4] ss:$8 sps:$4 sm:$0xff]   ;;  %v542_v37 = vld [vmem:[%s774_s3 + $0xe0] ss:$8 sps:$4 sm:$0xff]   ;;  %v543_v38 = vld [vmem:[%s774_s3 + $0xd4] ss:$8 sps:$4 sm:$0xff]  }
  0x23   :  { %v545_v39 = vld [vmem:[%s774_s3 + $0xd0] ss:$8 sps:$4 sm:$0xff]   ;;  %v546_v40 = vld [vmem:[%s774_s3 + $0xc4] ss:$8 sps:$4 sm:$0xff]   ;;  %v548_v41 = vld [vmem:[%s774_s3 + $0xc0] ss:$8 sps:$4 sm:$0xff]  }
  0x24   :  { %393 = vmatpush1.bf16.msra.mxu1 %v533_v31  ;;  %v549_v42 = vld [vmem:[%s774_s3 + $0xb4] ss:$8 sps:$4 sm:$0xff]   ;;  %v551_v43 = vld [vmem:[%s774_s3 + $0xb0] ss:$8 sps:$4 sm:$0xff]   ;;  %v552_v44 = vld [vmem:[%s774_s3 + $0xa4] ss:$8 sps:$4 sm:$0xff]  }
  0x25   :  { %394 = vmatprep.subr.bf16.mxu1 %v534_v32  ;;  %v554_v45 = vld [vmem:[%s774_s3 + $0xa0] ss:$8 sps:$4 sm:$0xff]   ;;  %v555_v46 = vld [vmem:[%s774_s3 + $0x94] ss:$8 sps:$4 sm:$0xff]   ;;  %v557_v47 = vld [vmem:[%s774_s3 + $0x90] ss:$8 sps:$4 sm:$0xff]  }
  0x26   :  { %v558_v48 = vld [vmem:[%s774_s3 + $0x84] ss:$8 sps:$4 sm:$0xff]   ;;  %v560_v49 = vld [vmem:[%s774_s3 + $0x80] ss:$8 sps:$4 sm:$0xff]   ;;  %v42_v51 = vshrl.u32 %v41_v50, 7 }
  0x27   :  { %v39_v53 = vld [vmem:[%s773_s2] sm:$0x3]  ;;  %s584_s2 = smov [#allocation2]  }
  0x28   :  { %395 = vmatpush1.bf16.msra.mxu1 %v536_v33  ;;  %v43_v52 = vsub.s32 0, %v42_v51  ;;  %v47_v54 = vsub.s32 1, %v42_v51  ;;  %v208_v3 = vld [vmem:[%s775_s4] sm:$0x3]  ;;  %s431_s15 = sshll.u32 %s584_s2, 4  ;;  %s432_s15 = int_to_ptr.vmem [resolvable:$true] %s431_s15 }
  0x29   :  { %396 = vmatprep.subr.bf16.mxu1 %v537_v34  ;;  %s561_s16 = scalar_lea.vmem %s432_s15, 256  ;;  %p566_p1 = scmp.lt.s32.totalorder %s432_s15, %s432_s15 }
  0x2a   :  { %v44_v55 = vrot.slane %v39_v53, %v43_v52  ;;  %v48_v56 = vrot.slane %v39_v53, %v47_v54  ;;  %v213_v4 = vrot.slane %v208_v3, %v43_v52  ;;  %v217_v5 = vrot.slane %v208_v3, %v47_v54  ;;  %p562_p0 = scmp.ne.s32.totalorder %s432_s15, %s561_s16  ;;  %p567_p2 = scmp.lt.s32.totalorder %s561_s16, %s561_s16 }
  0x2c   :  { %397 = vmatpush2.bf16.msra.mxu1 %v539_v35  ;;  %p568_p3 = por %p567_p2, %p566_p1 }
  0x2d   :  { %398 = vmatprep.subr.bf16.mxu1 %v540_v36 }
  0x2e   :  { %p569_p4 = pnand %p568_p3, %p562_p0 }
  0x30   :  { %399 = vmatpush2.bf16.msra.mxu1 %v542_v37 }
  0x31   :  { %400 = vmatprep.subr.bf16.mxu1 %v543_v38 }
  0x34   :  { %401 = vmatpush2.bf16.msra.mxu1 %v545_v39 }
  0x35   :  { %402 = vmatprep.subr.bf16.mxu1 %v546_v40 }
  0x38   :  { %403 = vmatpush2.bf16.msra.mxu1 %v548_v41 }
  0x39   :  { %404 = vmatprep.subr.bf16.mxu1 %v549_v42 }
  0x3c   :  { %405 = vmatpush2.bf16.msra.mxu1 %v551_v43 }
  0x3d   :  { %406 = vmatprep.subr.bf16.mxu1 %v552_v44 }
  0x40   :  { %407 = vmatpush2.bf16.msra.mxu1 %v554_v45 }
  0x41   :  { %408 = vmatprep.subr.bf16.mxu1 %v555_v46 }
  0x44   :  { %409 = vmatpush2.bf16.msra.mxu1 %v557_v47 }
  0x45   :  { %410 = vmatprep.subr.bf16.mxu1 %v558_v48 }
  0x48   :  { %411 = vmatpush2.bf16.msra.mxu1 %v560_v49 }
  0xe2   :  { %v165_v57 = vpop.f32.mrf.mxu0 }
  0xe3   :  { %v166_v58 = vadd.f32 %v165_v57, %v44_v55 }
  0xe4   :  { %v167_v59 = vpop.f32.mrf.mxu0 }
  0xe5   :  { %v168_v60 = vadd.f32 %v167_v59, %v48_v56  ;;  %v172_v61 = vmax.f32 %v166_v58, 0.0 }
  0xe6   :  { %v169_v62 = vpop.f32.mrf.mxu0 }
  0xe7   :  { %v173_v63 = vmax.f32 %v168_v60, 0.0  ;;  %v174_v2 = vpack.c.bf16 %v172_v61, %v172_v61 }
  0xe8   :  { %v170_v0 = vpop.f32.mrf.mxu0 }
  0xe9   :  { %v175_v1 = vpack.c.bf16 %v173_v63, %v173_v63 }
  0xeb   :  { %412 = vmatprep.mubr.bf16.mxu1 %v175_v1 }
  0xec   :  { %413 = vmatmul.mubr.bf16.vlgmr.msra.gmra.mxu1 %v174_v2 }
 0x1ac   :  { %v414_v6 = vpop.f32.mrf.mxu1 }
 0x1ad   :  { %v415_v7 = vadd.f32 %v414_v6, %v213_v4 }
 0x1ae   :  { %v416_v8 = vpop.f32.mrf.mxu1 }
 0x1af   :  { %v421_v9 = vmax.f32 %v415_v7, 0.0  ;;  %v417_v10 = vadd.f32 %v416_v8, %v217_v5 }
 0x1b0   :  { %v418_v11 = vpop.f32.mrf.mxu1 }
 0x1b1   :  { %423 = vst [vmem:[#allocation2] sm:$0xff] %v421_v9  ;;  %v422_v12 = vmax.f32 %v417_v10, 0.0 }
 0x1b2   :  { %v419_v13 = vpop.f32.mrf.mxu1 }
 0x1b3   :  { %424 = vst [vmem:[#allocation2 + $0x8] sm:$0xff] %v422_v12 }
 0x1b4   :  { %572 = shalt.err (!%p569_p4)
}
 0x1b5   :  { %434 = dma.vmem_to_hbm [thread:$0]  %s432_s15, 256, %s776_s5, [#allocation3]  }
 0x1b6   :  { %581 = dma.done.wait [#allocation3], 256  }
 0x1b7   :  { %582 = vsyncadd [#allocation3], 4294967040 }
 0x1b8   :  { %438 = vsyncpa [#allocation3], 1 }

</bundles_post_ra>
